<compile_context>
chip_gen: v7x
topology: tpu7x:2x2x1
jax: 0.10.0
libtpu: 0.0.40
codegen_flags: <defaults>
</compile_context>

<pallas_src>
import numpy as np
import jax
import jax.numpy as jnp
from jax.experimental import pallas as pl
from jax.experimental.pallas import tpu as pltpu


_LANES = 512                            # multiple of 128 (vreg lanes) and of 4 (box coords)
_TARGET_BLOCK_BYTES = 2 * 1024 * 1024   # ~2 MiB blocks -> near-roofline mem-bound stream


def _round_up(x, m):
    return ((x + m - 1) // m) * m


# ----------------------------------------------------------------------------
# Kernel: streaming clamp of a (TR, 512) tile against per-lane bound rows.
#   lane % 4 == 0, 1 -> lower bound 0      (upper bound +inf)
#   lane % 4 == 2    -> upper bound width  (lower bound -inf)
#   lane % 4 == 3    -> upper bound height (lower bound -inf)
# ----------------------------------------------------------------------------
def _clip_boxes_kernel(lo_ref, hi_ref, x_ref, o_ref):
    x = x_ref[...].astype(jnp.float32)
    y = jnp.minimum(jnp.maximum(x, lo_ref[...]), hi_ref[...])
    o_ref[...] = y.astype(o_ref.dtype)


def clip_boxes_pallas(boxes, height, width):
    """boxes: (B, N, 4) float array. Returns clipped boxes, same shape/dtype."""
    B, N, four = boxes.shape
    assert four == 4, "boxes last dim must be 4"
    dtype = boxes.dtype
    itemsize = jnp.dtype(dtype).itemsize

    L = _LANES
    assert L % 128 == 0 and L % 4 == 0

    E = B * N * 4
    # Rows of the sublane-filled 2-D view; pad row count to a multiple of 8.
    R = _round_up(max(pl.cdiv(E, L), 1), 8)
    E_pad = R * L

    # Row tile: ~2 MiB per block, multiple of 8 sublanes, never larger than R.
    TR = max(8, min(_round_up(_TARGET_BLOCK_BYTES // (L * itemsize), 8), R))
    grid_len = pl.cdiv(R, TR)
    if grid_len == 1 and R >= 16:
        # Keep >= 2 grid steps so v7x's two TensorCores both contribute HBM BW.
        TR = _round_up(pl.cdiv(R, 2), 8)
        grid_len = pl.cdiv(R, TR)

    # Row-major flatten: flat index i is coordinate i % 4; since L % 4 == 0,
    # after reshape to (R, L) lane l of every row is coordinate l % 4.
    flat = boxes.reshape(-1)
    if E_pad != E:
        flat = jnp.pad(flat, (0, E_pad - E))
    x2d = flat.reshape(R, L)

    # Per-lane clamp bounds, built once as (1, L) f32 rows (resident in VMEM
    # across grid steps — constant block index in their BlockSpec).
    lo_pat = jnp.array([0.0, 0.0, -jnp.inf, -jnp.inf], dtype=jnp.float32)
    hi_pat = jnp.array([jnp.inf, jnp.inf, float(width), float(height)],
                       dtype=jnp.float32)
    lo = jnp.tile(lo_pat, L // 4).reshape(1, L)
    hi = jnp.tile(hi_pat, L // 4).reshape(1, L)

    out2d = pl.pallas_call(
        _clip_boxes_kernel,
        out_shape=jax.ShapeDtypeStruct((R, L), dtype),
        grid=(grid_len,),
        in_specs=[
            pl.BlockSpec((1, L), lambda i: (0, 0)),    # lo bounds row
            pl.BlockSpec((1, L), lambda i: (0, 0)),    # hi bounds row
            pl.BlockSpec((TR, L), lambda i: (i, 0)),   # boxes tile
        ],
        out_specs=pl.BlockSpec((TR, L), lambda i: (i, 0)),
        input_output_aliases={2: 0},                   # clamp "in place"
        compiler_params=pltpu.CompilerParams(
            dimension_semantics=("parallel",),
        ),
        cost_estimate=pl.CostEstimate(
            flops=2 * E_pad,
            transcendentals=0,
            bytes_accessed=2 * E_pad * itemsize + 2 * L * 4,
        ),
    )(lo, hi, x2d)

    return out2d.reshape(-1)[:E].reshape(B, N, 4)


# ----------------------------------------------------------------------------
# Module wrapper (same interface as the PyTorch nn.Module)
# ----------------------------------------------------------------------------
class ClipBoxes:
    def __init__(self, width=None, height=None):
        # TODO(synk): PyTorch mutates `boxes` in place; JAX is functional, so
        # the clipped boxes are returned (the Pallas output aliases the input
        # buffer via input_output_aliases instead).
        pass

    def forward(self, boxes, img):
        batch_size, num_channels, height, width = img.shape
        return clip_boxes_pallas(boxes, height, width)


# ----------------------------------------------------------------------------
# Pure-numpy reference (for verification)
# ----------------------------------------------------------------------------
def _reference_clip(boxes_np, height, width):
    b = boxes_np.copy()
    b[:, :, 0] = np.maximum(b[:, :, 0], 0.0)
    b[:, :, 1] = np.maximum(b[:, :, 1], 0.0)
    b[:, :, 2] = np.minimum(b[:, :, 2], float(width))
    b[:, :, 3] = np.minimum(b[:, :, 3], float(height))
    return b


if __name__ == "__main__":
    key = jax.random.PRNGKey(0)
    k_img, k_box1, k_box2 = jax.random.split(key, 3)

    # Small NCHW image consistent with the module (only its shape is used).
    img = jax.random.normal(k_img, (2, 4, 16, 16), dtype=jnp.float32)
    H, W = img.shape[2], img.shape[3]

    module = ClipBoxes()

    # Case 1: moderate box count.
    N1 = 96
    boxes1 = jax.random.uniform(k_box1, (2, N1, 4), dtype=jnp.float32,
                                minval=-12.0, maxval=28.0)
    out1 = jax.block_until_ready(module.forward(boxes1, img))
    ref1 = _reference_clip(np.asarray(boxes1), H, W)
    assert out1.shape == boxes1.shape and out1.dtype == boxes1.dtype
    np.testing.assert_allclose(np.asarray(out1), ref1, rtol=1e-6, atol=1e-6)

    # Case 2: small ragged case (exercises the tail-padding path).
    N2 = 7
    boxes2 = jax.random.uniform(k_box2, (2, N2, 4), dtype=jnp.float32,
                                minval=-12.0, maxval=28.0)
    out2 = jax.block_until_ready(module.forward(boxes2, img))
    ref2 = _reference_clip(np.asarray(boxes2), H, W)
    np.testing.assert_allclose(np.asarray(out2), ref2, rtol=1e-6, atol=1e-6)

    print("KERNEL_OK")
</pallas_src>

<mosaic_0001>
module attributes {stable_mosaic.version = 11 : i64} {
  func.func @_clip_boxes_kernel(%arg0: i32, %arg1: memref<1x512xf32, #tpu.memory_space<vmem>>, %arg2: memref<1x512xf32, #tpu.memory_space<vmem>>, %arg3: memref<8x512xf32, #tpu.memory_space<vmem>>, %arg4: memref<8x512xf32, #tpu.memory_space<vmem>>) attributes {dimension_semantics = [#tpu.dimension_semantics<parallel>], iteration_bounds = array<i64: 1>, scalar_prefetch = 0 : i64, scratch_operands = 0 : i64, tpu.core_type = #tpu.core_type<tc>, window_params = [{pipeline_mode = #tpu.pipeline_mode<synchronous>, transform_indices = @transform_0, window_bounds = array<i64: 1, 512>}, {pipeline_mode = #tpu.pipeline_mode<synchronous>, transform_indices = @transform_1, window_bounds = array<i64: 1, 512>}, {transform_indices = @transform_2, window_bounds = array<i64: 8, 512>}, {transform_indices = @transform_3, window_bounds = array<i64: 8, 512>}]} {
    %c0 = arith.constant 0 : index
    %c0_0 = arith.constant 0 : index
    %0 = vector.load %arg3[%c0, %c0_0] : memref<8x512xf32, #tpu.memory_space<vmem>>, vector<8x512xf32>
    %c0_1 = arith.constant 0 : index
    %c0_2 = arith.constant 0 : index
    %1 = vector.load %arg1[%c0_1, %c0_2] : memref<1x512xf32, #tpu.memory_space<vmem>>, vector<1x512xf32>
    %2 = vector.broadcast %1 : vector<1x512xf32> to vector<8x512xf32>
    %3 = arith.maximumf %0, %2 : vector<8x512xf32>
    %c0_3 = arith.constant 0 : index
    %c0_4 = arith.constant 0 : index
    %4 = vector.load %arg2[%c0_3, %c0_4] : memref<1x512xf32, #tpu.memory_space<vmem>>, vector<1x512xf32>
    %5 = vector.broadcast %4 : vector<1x512xf32> to vector<8x512xf32>
    %6 = arith.minimumf %3, %5 : vector<8x512xf32>
    %c0_5 = arith.constant 0 : index
    %c0_6 = arith.constant 0 : index
    %7 = vector.load %arg4[%c0_5, %c0_6] : memref<8x512xf32, #tpu.memory_space<vmem>>, vector<8x512xf32>
    tpu.vector_store %arg4[%c0_5, %c0_6], %6 {strides = array<i32>} : memref<8x512xf32, #tpu.memory_space<vmem>>, vector<8x512xf32>,
    return
  }
  func.func @transform_0(%arg0: i32) -> (i32, i32) {
    %c0_i32 = arith.constant 0 : i32
    %c0_i32_0 = arith.constant 0 : i32
    %c0_i32_1 = arith.constant 0 : i32
    return %c0_i32, %c0_i32_0 : i32, i32
  }
  func.func @transform_1(%arg0: i32) -> (i32, i32) {
    %c0_i32 = arith.constant 0 : i32
    %c0_i32_0 = arith.constant 0 : i32
    %c0_i32_1 = arith.constant 0 : i32
    return %c0_i32, %c0_i32_0 : i32, i32
  }
  func.func @transform_2(%arg0: i32) -> (i32, i32) {
    %c0_i32 = arith.constant 0 : i32
    %c0_i32_0 = arith.constant 0 : i32
    return %arg0, %c0_i32 : i32, i32
  }
  func.func @transform_3(%arg0: i32) -> (i32, i32) {
    %c0_i32 = arith.constant 0 : i32
    %c0_i32_0 = arith.constant 0 : i32
    return %arg0, %c0_i32 : i32, i32
  }
}

</mosaic_0001>

<bundles_post_ra>
// kernel: tpu_custom_call.1
= control target key start
LH: loop header
LB: loop body
LE: loop exit
PB: predicated region body
PF: predicated region fallthrough
CT: control target
= control target key end

     0   :  { %8 = vsyncpa [#allocation3], 0  ;;  %s204_s0 = inlined_call_operand.vmem [shape: f32[1,512], index: 0, kind: input, shape index: {}]   ;;  %s205_s1 = inlined_call_operand.vmem [shape: f32[1,512], index: 1, kind: input, shape index: {}]   ;;  %s206_s2 = inlined_call_operand.hbm [shape: f32[8,512], index: 2, kind: input, shape index: {}, may-alias: {2,3}]   ;;  %s207_s3 = inlined_call_operand.hbm [shape: f32[8,512], index: 3, kind: output, shape index: {}, may-alias: {2,3}]  }
   0x1   :  { %9 = vsyncpa [#allocation4], 0  ;;  %s152_s12 = smov [#allocation2]   ;;  %s104_s16 = scalar_lea.hbm %s206_s2, 512 }
   0x2   :  { %s20_s13 = sshll.u32 %s152_s12, 4  ;;  %p105_p0 = scmp.ne.s32.totalorder %s206_s2, %s104_s16  ;;  %s21_s13 = int_to_ptr.vmem [resolvable:$true] %s20_s13 }
   0x3   :  { %p108_p1 = scmp.lt.u32.totalorder %s104_s16, %s206_s2 }
   0x5   :  { %p110_p2 = pnand %p108_p1, %p105_p0 }
   0x7   :  { %113 = shalt.err (!%p110_p2)
}
   0x8   :  { %s114_s21 = scalar_lea.vmem %s21_s13, 512  ;;  %p119_p4 = scmp.lt.s32.totalorder %s21_s13, %s21_s13 }
   0x9   :  { %p115_p3 = scmp.ne.s32.totalorder %s21_s13, %s114_s21  ;;  %p120_p5 = scmp.lt.s32.totalorder %s114_s21, %s114_s21 }
   0xb   :  { %p121_p6 = por %p120_p5, %p119_p4 }
   0xd   :  { %p122_p7 = pnand %p121_p6, %p115_p3 }
   0xf   :  { %125 = shalt.err (!%p122_p7)
}
  0x10   :  { %23 = dma.hbm_to_vmem [thread:$0]  %s206_s2, 512, %s21_s13, [#allocation3]  }
  0x11   :  { %148 = dma.done.wait [#allocation3], 512  }
  0x12   :  { %149 = vsyncadd [#allocation3], 4294966784  ;;  %v33_v0 = vlaneseq  ;;  %v27_v6 = vld [vmem:[#allocation2] sm:$0xff]  ;;  %v28_v11 = vld [vmem:[#allocation2 + $0x8] sm:$0xff]  ;;  %s153_s2 = smov [#allocation5]  }
  0x13   :  { %v31_v7 = vld [vmem:[%s204_s0] sm:$0xf]  ;;  %v29_v14 = vld [vmem:[#allocation2 + $0x10] sm:$0xff]  ;;  %v30_v15 = vld [vmem:[#allocation2 + $0x18] sm:$0xff]  ;;  %s93_s28 = sshll.u32 %s153_s2, 4  ;;  %s94_s28 = int_to_ptr.vmem [resolvable:$true] %s93_s28 }
  0x14   :  { %v34_v1 = vshrl.u32 %v33_v0, 7  ;;  %v57_v8 = vld [vmem:[%s205_s1] sm:$0xf]  ;;  %s126_s0 = scalar_lea.vmem %s94_s28, 512  ;;  %p131_p9 = scmp.lt.s32.totalorder %s94_s28, %s94_s28 }
  0x15   :  { %p127_p8 = scmp.ne.s32.totalorder %s94_s28, %s126_s0  ;;  %p132_p10 = scmp.lt.s32.totalorder %s126_s0, %s126_s0 }
  0x16   :  { %v35_v2 = vsub.s32 0, %v34_v1  ;;  %v39_v3 = vsub.s32 1, %v34_v1  ;;  %v43_v4 = vsub.s32 2, %v34_v1  ;;  %v47_v5 = vsub.s32 3, %v34_v1 }
  0x17   :  { %p133_p11 = por %p132_p10, %p131_p9 }
  0x18   :  { %v36_v9 = vrot.slane %v31_v7, %v35_v2  ;;  %v62_v10 = vrot.slane %v57_v8, %v35_v2  ;;  %v40_v12 = vrot.slane %v31_v7, %v39_v3  ;;  %v66_v13 = vrot.slane %v57_v8, %v39_v3 }
  0x19   :  { %v44_v16 = vrot.slane %v31_v7, %v43_v4  ;;  %v70_v17 = vrot.slane %v57_v8, %v43_v4  ;;  %v48_v18 = vrot.slane %v31_v7, %v47_v5  ;;  %v74_v19 = vrot.slane %v57_v8, %v47_v5  ;;  %p134_p12 = pnand %p133_p11, %p127_p8 }
  0x1a   :  { %v53_v20 = vmax.f32 %v27_v6, %v36_v9  ;;  %v54_v21 = vmax.f32 %v28_v11, %v40_v12 }
  0x1b   :  { %v55_v22 = vmax.f32 %v29_v14, %v44_v16  ;;  %v56_v23 = vmax.f32 %v30_v15, %v48_v18 }
  0x1c   :  { %v79_v24 = vmin.f32 %v53_v20, %v62_v10  ;;  %v80_v25 = vmin.f32 %v54_v21, %v66_v13 }
  0x1d   :  { %v81_v26 = vmin.f32 %v55_v22, %v70_v17  ;;  %v82_v27 = vmin.f32 %v56_v23, %v74_v19 }
  0x1e   :  { %83 = vst [vmem:[#allocation5] sm:$0xff] %v79_v24  ;;  %84 = vst [vmem:[#allocation5 + $0x8] sm:$0xff] %v80_v25 }
  0x1f   :  { %85 = vst [vmem:[#allocation5 + $0x10] sm:$0xff] %v81_v26  ;;  %86 = vst [vmem:[#allocation5 + $0x18] sm:$0xff] %v82_v27 }
  0x20   :  { %137 = shalt.err (!%p134_p12)
}
  0x21   :  { %s138_s30 = scalar_lea.hbm %s207_s3, 512 }
  0x22   :  { %p139_p13 = scmp.ne.s32.totalorder %s207_s3, %s138_s30  ;;  %p142_p0 = scmp.lt.u32.totalorder %s138_s30, %s207_s3 }
  0x24   :  { %p144_p1 = pnand %p142_p0, %p139_p13 }
  0x26   :  { %147 = shalt.err (!%p144_p1)
}
  0x27   :  { %96 = dma.vmem_to_hbm [thread:$0]  %s94_s28, 512, %s207_s3, [#allocation4]  }
  0x28   :  { %150 = dma.done.wait [#allocation4], 512  }
  0x29   :  { %151 = vsyncadd [#allocation4], 4294966784 }
  0x2a   :  { %100 = vsyncpa [#allocation3], 1 }
  0x2b   :  { %101 = vsyncpa [#allocation4], 1 }

</bundles_post_ra>
